<compile_context>
chip_gen: v5e
topology: v5e:2x2
jax: 0.10.0
libtpu: 0.0.40
codegen_flags: <defaults>
</compile_context>

<pallas_src>
import jax
import jax.numpy as jnp
from jax.experimental import pallas as pl
from jax.experimental.pallas import tpu as pltpu


def _round_up(x, m):
    return ((x + m - 1) // m) * m


def _vmem_limit_bytes():
    """~80% of physical VMEM (leaves Mosaic headroom), capped; safe fallback."""
    try:
        cap = getattr(pltpu.get_tpu_info(), "vmem_capacity_bytes", None)
    except Exception:
        cap = None
    if cap:
        return int(min(cap * 0.8, 112 * 1024 * 1024))
    return 48 * 1024 * 1024  # <= v7x's 64 MiB per TensorCore, safe on all chips


def _choose_tm(M, D, H, in_bytes):
    """Row tile: ~2 MiB of streamed x per step, f32 [tm, H] temp <= ~8 MiB,
    128-granular, clamped to the problem, >= 2 grid steps when there is work."""
    tm = (2 * 1024 * 1024) // max(in_bytes * D, 1)
    tm = min(tm, (8 * 1024 * 1024) // max(4 * H, 1))
    tm = max(128, min(4096, _round_up(tm, 128)))
    m_ceil = _round_up(M, 128)
    tm = min(tm, m_ceil)
    if m_ceil >= 256:
        # Give v7x's two TensorCores at least two grid steps (no-op on v5e/v6e).
        tm = min(tm, max(128, _round_up(m_ceil // 2, 128)))
    return tm


def projection_kernel(x_ref, w1_ref, b1_ref, w2_ref, b2_ref, o_ref):
    # First linear on the MXU: [tm, D] @ [D, H], f32 accumulation.
    h = jnp.dot(x_ref[...], w1_ref[...], preferred_element_type=jnp.float32)
    # Bias + ReLU on the VPU (f32).
    h = jnp.maximum(h + b1_ref[...], 0.0)
    # TODO(synk): Dropout(0.3) is identity in eval mode; training-mode masking
    # (pltpu.prng_seed/prng_random_bits + 1/(1-p) scale) is not implemented.
    # Second linear (output width 1): contract w2 [1, H] against h's H axis
    # (q.k^T-style, MXU-native, no transpose of h). Result is a lane-dense
    # [1, tm] row -> wide unmasked stores instead of tm/8 masked 1-lane stores.
    y = jax.lax.dot_general(
        w2_ref[...], h,
        dimension_numbers=(((1,), (1,)), ((), ())),
        preferred_element_type=jnp.float32,
    )
    o_ref[...] = (y + b2_ref[0]).astype(o_ref.dtype)


def projection(x, w1, b1, w2, b2, *, compute_dtype=jnp.bfloat16):
    """Projection head: Linear(D->H) -> ReLU -> Dropout(eval) -> Linear(H->1).

    x:  [B, T, D]
    w1: [D, H], b1: [H]     (weights stored [in, out], i.e. PyTorch W.T)
    w2: [H, 1], b2: [1]
    returns [B, T, 1] in x.dtype
    """
    B, T, D = x.shape
    H = w1.shape[1]
    M = B * T
    out_dtype = x.dtype
    if compute_dtype is None:
        compute_dtype = x.dtype
    in_bytes = jnp.dtype(compute_dtype).itemsize
    out_bytes = jnp.dtype(out_dtype).itemsize

    tm = _choose_tm(M, D, H, in_bytes)
    grid = (pl.cdiv(M, tm),)  # ragged last block handled by Pallas; no jnp.pad copy

    # Streamed / large tensors in bf16 (f32 accumulation kept in the kernel);
    # biases and the tiny w2 row stay f32.
    x2 = x.reshape(M, D).astype(compute_dtype)
    w1c = w1.astype(compute_dtype)
    b1_2 = b1.astype(jnp.float32).reshape(1, H)
    w2_2 = w2.astype(jnp.float32).reshape(1, H)   # row form for the H-contraction
    b2_1 = b2.astype(jnp.float32).reshape(1)      # scalar -> SMEM

    cost = pl.CostEstimate(
        flops=2 * M * D * H + 2 * M * H,
        bytes_accessed=(M * D * in_bytes + D * H * in_bytes
                        + 2 * H * 4 + 4 + M * out_bytes),
        transcendentals=0,
    )

    out = pl.pallas_call(
        projection_kernel,
        out_shape=jax.ShapeDtypeStruct((1, M), out_dtype),
        grid_spec=pltpu.PrefetchScalarGridSpec(
            num_scalar_prefetch=0,
            grid=grid,
            in_specs=[
                pl.BlockSpec((tm, D), lambda i: (i, 0)),    # x rows (streamed)
                pl.BlockSpec((D, H), lambda i: (0, 0)),     # W1 (resident)
                pl.BlockSpec((1, H), lambda i: (0, 0)),     # b1 (resident)
                pl.BlockSpec((1, H), lambda i: (0, 0)),     # w2 row (resident)
                pl.BlockSpec(memory_space=pltpu.MemorySpace.SMEM),  # b2 scalar
            ],
            out_specs=pl.BlockSpec((1, tm), lambda i: (0, i)),  # lane-dense slab
        ),
        compiler_params=pltpu.CompilerParams(
            dimension_semantics=("parallel",),  # shards the row loop over v7x's 2 TCs
            vmem_limit_bytes=_vmem_limit_bytes(),
        ),
        cost_estimate=cost,
    )(x2, w1c, b1_2, w2_2, b2_1)

    return out.reshape(B, T, 1)


def _reference(x, w1, b1, w2, b2, compute_dtype):
    """Pure-JAX reference with the same input casting (eval-mode dropout = id)."""
    xc = x.astype(compute_dtype).astype(jnp.float32)
    w1c = w1.astype(compute_dtype).astype(jnp.float32)
    h = jnp.maximum(xc @ w1c + b1.astype(jnp.float32), 0.0)
    y = h @ w2.astype(jnp.float32) + b2.astype(jnp.float32)
    return y.astype(x.dtype)


def _init_params(key, input_dim, hidden_dim, dtype=jnp.float32):
    """Deterministic synthetic init (PyTorch-style uniform fan-in bounds)."""
    k1, k2, k3, k4 = jax.random.split(key, 4)
    bound1 = 1.0 / (input_dim ** 0.5)
    bound2 = 1.0 / (hidden_dim ** 0.5)
    w1 = jax.random.uniform(k1, (input_dim, hidden_dim), dtype, -bound1, bound1)
    b1 = jax.random.uniform(k2, (hidden_dim,), dtype, -bound1, bound1)
    w2 = jax.random.uniform(k3, (hidden_dim, 1), dtype, -bound2, bound2)
    b2 = jax.random.uniform(k4, (1,), dtype, -bound2, bound2)
    return w1, b1, w2, b2


if __name__ == "__main__":
    key = jax.random.PRNGKey(0)
    kx, kp, kx2 = jax.random.split(key, 3)

    B, T, D, H = 2, 8, 32, 32
    x = jax.random.normal(kx, (B, T, D), jnp.float32)
    w1, b1, w2, b2 = _init_params(kp, D, H)

    out = jax.block_until_ready(projection(x, w1, b1, w2, b2))
    assert out.shape == (B, T, 1)
    ref_bf = _reference(x, w1, b1, w2, b2, jnp.bfloat16)
    ref_f32 = jnp.maximum(x @ w1 + b1, 0.0) @ w2 + b2
    assert jnp.allclose(out, ref_bf, atol=1e-2, rtol=1e-2)
    assert jnp.allclose(out, ref_f32, atol=1e-1, rtol=1e-1)

    # Ragged multi-block case: M = 144 rows -> 2 grid steps, partial tail block.
    B2, T2 = 2, 72
    x_big = jax.random.normal(kx2, (B2, T2, D), jnp.float32)
    out2 = jax.block_until_ready(projection(x_big, w1, b1, w2, b2))
    assert out2.shape == (B2, T2, 1)
    ref2 = _reference(x_big, w1, b1, w2, b2, jnp.bfloat16)
    assert jnp.allclose(out2, ref2, atol=1e-2, rtol=1e-2)

    print("KERNEL_OK")
</pallas_src>

<mosaic_0001>
module attributes {stable_mosaic.version = 11 : i64} {
  func.func @projection_kernel(%arg0: i32, %arg1: memref<128x32xbf16, #tpu.memory_space<vmem>>, %arg2: memref<32x32xbf16, #tpu.memory_space<vmem>>, %arg3: memref<1x32xf32, #tpu.memory_space<vmem>>, %arg4: memref<1x32xf32, #tpu.memory_space<vmem>>, %arg5: memref<1xf32, #tpu.memory_space<smem>>, %arg6: memref<1x128xf32, #tpu.memory_space<vmem>>) attributes {dimension_semantics = [#tpu.dimension_semantics<parallel>], iteration_bounds = array<i64: 1>, scalar_prefetch = 0 : i64, scratch_operands = 0 : i64, tpu.core_type = #tpu.core_type<tc>, window_params = [{transform_indices = @transform_0, window_bounds = array<i64: 128, 32>}, {pipeline_mode = #tpu.pipeline_mode<synchronous>, transform_indices = @transform_1, window_bounds = array<i64: 32, 32>}, {pipeline_mode = #tpu.pipeline_mode<synchronous>, transform_indices = @transform_2, window_bounds = array<i64: 1, 32>}, {pipeline_mode = #tpu.pipeline_mode<synchronous>, transform_indices = @transform_3, window_bounds = array<i64: 1, 32>}, {transform_indices = @transform_4, window_bounds = array<i64: 1>}, {transform_indices = @transform_5, window_bounds = array<i64: 1, 128>}]} {
    %c0 = arith.constant 0 : index
    %c0_0 = arith.constant 0 : index
    %0 = vector.load %arg1[%c0, %c0_0] : memref<128x32xbf16, #tpu.memory_space<vmem>>, vector<128x32xbf16>
    %c0_1 = arith.constant 0 : index
    %c0_2 = arith.constant 0 : index
    %1 = vector.load %arg2[%c0_1, %c0_2] : memref<32x32xbf16, #tpu.memory_space<vmem>>, vector<32x32xbf16>
    %cst = arith.constant dense<0.000000e+00> : vector<128x32xf32>
    %2 = tpu.matmul %0, %1, %cst {dimension_numbers = #tpu.dot_dimension_numbers<[1], [0], [0], [1], [0, 0, 1, 1], [], []>} : vector<128x32xbf16>, vector<32x32xbf16>, vector<128x32xf32> -> vector<128x32xf32>
    %c0_3 = arith.constant 0 : index
    %c0_4 = arith.constant 0 : index
    %3 = vector.load %arg3[%c0_3, %c0_4] : memref<1x32xf32, #tpu.memory_space<vmem>>, vector<1x32xf32>
    %4 = vector.broadcast %3 : vector<1x32xf32> to vector<128x32xf32>
    %5 = arith.addf %2, %4 : vector<128x32xf32>
    %cst_5 = arith.constant 0.000000e+00 : f32
    %6 = vector.broadcast %cst_5 : f32 to vector<128x32xf32>
    %7 = arith.maximumf %5, %6 : vector<128x32xf32>
    %c0_6 = arith.constant 0 : index
    %c0_7 = arith.constant 0 : index
    %8 = vector.load %arg4[%c0_6, %c0_7] : memref<1x32xf32, #tpu.memory_space<vmem>>, vector<1x32xf32>
    %cst_8 = arith.constant dense<0.000000e+00> : vector<1x128xf32>
    %9 = tpu.matmul %8, %7, %cst_8 {dimension_numbers = #tpu.dot_dimension_numbers<[1], [1], [0], [0], [0, 0, 1, 0], [], []>} : vector<1x32xf32>, vector<128x32xf32>, vector<1x128xf32> -> vector<1x128xf32>
    %c0_9 = arith.constant 0 : index
    %10 = memref.load %arg5[%c0_9] : memref<1xf32, #tpu.memory_space<smem>>
    %11 = vector.broadcast %10 : f32 to vector<1x128xf32>
    %12 = arith.addf %9, %11 : vector<1x128xf32>
    %c0_10 = arith.constant 0 : index
    %c0_11 = arith.constant 0 : index
    %13 = vector.load %arg6[%c0_10, %c0_11] : memref<1x128xf32, #tpu.memory_space<vmem>>, vector<1x128xf32>
    tpu.vector_store %arg6[%c0_10, %c0_11], %12 {strides = array<i32>} : memref<1x128xf32, #tpu.memory_space<vmem>>, vector<1x128xf32>,
    return
  }
  func.func @transform_0(%arg0: i32) -> (i32, i32) {
    %c0_i32 = arith.constant 0 : i32
    %c0_i32_0 = arith.constant 0 : i32
    return %arg0, %c0_i32 : i32, i32
  }
  func.func @transform_1(%arg0: i32) -> (i32, i32) {
    %c0_i32 = arith.constant 0 : i32
    %c0_i32_0 = arith.constant 0 : i32
    %c0_i32_1 = arith.constant 0 : i32
    return %c0_i32, %c0_i32_0 : i32, i32
  }
  func.func @transform_2(%arg0: i32) -> (i32, i32) {
    %c0_i32 = arith.constant 0 : i32
    %c0_i32_0 = arith.constant 0 : i32
    %c0_i32_1 = arith.constant 0 : i32
    return %c0_i32, %c0_i32_0 : i32, i32
  }
  func.func @transform_3(%arg0: i32) -> (i32, i32) {
    %c0_i32 = arith.constant 0 : i32
    %c0_i32_0 = arith.constant 0 : i32
    %c0_i32_1 = arith.constant 0 : i32
    return %c0_i32, %c0_i32_0 : i32, i32
  }
  func.func @transform_4(%arg0: i32) -> i32 {
    %c0_i32 = arith.constant 0 : i32
    %c0_i32_0 = arith.constant 0 : i32
    return %c0_i32 : i32
  }
  func.func @transform_5(%arg0: i32) -> (i32, i32) {
    %c0_i32 = arith.constant 0 : i32
    %c0_i32_0 = arith.constant 0 : i32
    return %c0_i32, %arg0 : i32, i32
  }
}

</mosaic_0001>

<bundles_post_ra>
// kernel: tpu_custom_call.1
= control target key start
LH: loop header
LB: loop body
LE: loop exit
PB: predicated region body
PF: predicated region fallthrough
CT: control target
= control target key end

     0   :  { %11 = vsyncpa [#allocation4], 0  ;;  %s555_s0 = inlined_call_operand.hbm [shape: bf16[16,32], index: 0, kind: input, shape index: {}]   ;;  %s556_s1 = inlined_call_operand.hbm [shape: bf16[32,32], index: 1, kind: input, shape index: {}]   ;;  %s557_s2 = inlined_call_operand.vmem [shape: f32[1,32], index: 2, kind: input, shape index: {}]   ;;  %s558_s3 = inlined_call_operand.vmem [shape: f32[1,32], index: 3, kind: input, shape index: {}]   ;;  %s559_s4 = inlined_call_operand.<no memory space> [shape: f32[1], index: 4, kind: input, shape index: {}]   ;;  %s560_s5 = inlined_call_operand.hbm [shape: f32[1,16], index: 5, kind: output, shape index: {}]  }
   0x1   :  { %12 = vsyncpa [#allocation7], 0 }
   0x2   :  { %13 = vsyncpa [#allocation5], 0 }
   0x3   :  { %17 = vsyncadd [#allocation4], 896  ;;  %s18_s20 = sshll.u32 %s555_s0, 4  ;;  %s477_s21 = smov [#allocation3]   ;;  %s19_s20 = int_to_ptr.hbm [resolvable:$true] %s18_s20 }
   0x4   :  { %s20_s22 = sshll.u32 %s477_s21, 4  ;;  %s31_s25 = sshll.u32 %s556_s1, 4  ;;  %s21_s22 = int_to_ptr.vmem [resolvable:$true] %s20_s22  ;;  %s32_s25 = int_to_ptr.hbm [resolvable:$true] %s31_s25 }
   0x5   :  { %s478_s26 = smov 64   ;;  %s479_s27 = smov 4  }
   0x6   :  { %26 = dma.hbm_to_vmem [thread:$0]  %s19_s20, 128, %s21_s22, [#allocation4], %s478_s26, %s478_s26, %s479_s27  }
   0x7   :  { %s480_s28 = smov [#allocation6]  }
   0x8   :  { %s33_s29 = sshll.u32 %s480_s28, 4  ;;  %s34_s29 = int_to_ptr.vmem [resolvable:$true] %s33_s29 }
   0x9   :  { %39 = dma.hbm_to_vmem [thread:$0]  %s32_s25, 256, %s34_s29, [#allocation7], %s478_s26, %s478_s26, %s479_s27  }
   0xa   :  { %471 = dma.done.wait [#allocation4], 1024  }
   0xb   :  { %472 = vsyncadd [#allocation4], 4294966272 }
   0xc   :  { %473 = dma.done.wait [#allocation7], 256  }
   0xd   :  { %474 = vsyncadd [#allocation7], 4294967040  ;;  %v388_v0 = vld [vmem:[#allocation6 + $0x8] sm:$0xff]  ;;  %v387_v1 = vld [vmem:[#allocation6] sm:$0xff]  ;;  %vm131_vm0 = vcmask 261120   ;;  %v223_v60 = vstv %s559_s4  ;;  %s481_s8 = smov [#allocation8]  }
   0xe   :  { %389 = vmatpush.bf16.msra.mxu2 %v388_v0  ;;  %390 = vmatpush.bf16.msra.mxu3 %v388_v0  ;;  %v382_v2 = vld [vmem:[#allocation3 + $0x18] sm:$0xff]  ;;  %v385_v3 = vld [vmem:[#allocation3 + $0x30] sm:$0xff]  ;;  %v379_v4 = vld [vmem:[#allocation3] sm:$0xff]  ;;  %s301_s9 = sshll.u32 %s481_s8, 4  ;;  %s303_s12 = sshll.u32 %s560_s5, 4  ;;  %s302_s9 = int_to_ptr.vmem [resolvable:$true] %s301_s9  ;;  %s304_s12 = int_to_ptr.hbm [resolvable:$true] %s303_s12 }
   0xf   :  { %162 = vmatpush.bf16.msra.mxu0 %v388_v0  ;;  %v383_v5 = vld [vmem:[#allocation3 + $0x20] sm:$0xff]  ;;  %v386_v6 = vld [vmem:[#allocation3 + $0x38] sm:$0xff]  ;;  %v380_v7 = vld [vmem:[#allocation3 + $0x8] sm:$0xff] }
  0x10   :  { %v384_v8 = vld [vmem:[#allocation3 + $0x28] sm:$0xff]  ;;  %v381_v9 = vld [vmem:[#allocation3 + $0x10] sm:$0xff]  ;;  %v398_v18 = vld [vmem:[%s557_s2] ss:$0 sm:$0xff] }
  0x11   :  { %v221_v59 = vld [vmem:[%s558_s3] sm:$0x1] }
  0x12   :  { %391 = vmatpush.bf16.msra.mxu2 %v387_v1  ;;  %392 = vmatpush.bf16.msra.mxu3 %v387_v1 }
  0x13   :  { %163 = vmatpush.bf16.msra.mxu0 %v387_v1 }
  0x15   :  { %357 = vmatmul.msk.bf16.vlgmr.msra.gmra.mxu2 %vm131_vm0, %v382_v2  ;;  %360 = vmatmul.msk.bf16.vlgmr.msra.gmra.mxu3 %vm131_vm0, %v385_v3 }
  0x16   :  { %354 = vmatmul.msk.bf16.vlgmr.msra.gmra.mxu0 %vm131_vm0, %v379_v4 }
  0x25   :  { %358 = vmatmul.msk.bf16.gmra.mxu2 %vm131_vm0, %v383_v5  ;;  %361 = vmatmul.msk.bf16.gmra.mxu3 %vm131_vm0, %v386_v6 }
  0x26   :  { %355 = vmatmul.msk.bf16.gmra.mxu0 %vm131_vm0, %v380_v7 }
  0x35   :  { %359 = vmatmul.msk.bf16.gmra.mxu2 %vm131_vm0, %v384_v8 }
  0x36   :  { %356 = vmatmul.msk.bf16.gmra.mxu0 %vm131_vm0, %v381_v9 }
  0x93   :  { %v165_v14 = vpop.f32.mrf.mxu0 }
  0x94   :  { %v166_v56 = vadd.f32 %v398_v18, %v165_v14 }
  0x96   :  { %v205_v58 = vmax.f32 %v166_v56, 0.0 }
  0x98   :  { %v180_v10 = vpop.f32.mrf.mxu2  ;;  %v195_v11 = vpop.f32.mrf.mxu3 }
  0x99   :  { %v196_v28 = vadd.f32 %v398_v18, %v195_v11  ;;  %v181_v43 = vadd.f32 %v398_v18, %v180_v10 }
  0x9b   :  { %v167_v17 = vpop.f32.mrf.mxu0  ;;  %v217_v30 = vmax.f32 %v196_v28, 0.0  ;;  %v211_v46 = vmax.f32 %v181_v43, 0.0 }
  0x9c   :  { %v168_v54 = vadd.f32 %v398_v18, %v167_v17 }
  0x9e   :  { %v206_v57 = vmax.f32 %v168_v54, 0.0 }
  0xa0   :  { %v182_v12 = vpop.f32.mrf.mxu2  ;;  %v197_v13 = vpop.f32.mrf.mxu3 }
  0xa1   :  { %v198_v25 = vadd.f32 %v398_v18, %v197_v13  ;;  %v183_v41 = vadd.f32 %v398_v18, %v182_v12 }
  0xa3   :  { %v170_v24 = vpop.f32.mrf.mxu0  ;;  %v218_v29 = vmax.f32 %v198_v25, 0.0  ;;  %v212_v44 = vmax.f32 %v183_v41, 0.0 }
  0xa4   :  { %v171_v52 = vadd.f32 %v398_v18, %v170_v24 }
  0xa6   :  { %v207_v55 = vmax.f32 %v171_v52, 0.0 }
  0xa8   :  { %v185_v15 = vpop.f32.mrf.mxu2  ;;  %v200_v16 = vpop.f32.mrf.mxu3 }
  0xa9   :  { %v201_v22 = vadd.f32 %v398_v18, %v200_v16  ;;  %v186_v39 = vadd.f32 %v398_v18, %v185_v15 }
  0xab   :  { %v219_v26 = vmax.f32 %v201_v22, 0.0  ;;  %v172_v31 = vpop.f32.mrf.mxu0  ;;  %v213_v42 = vmax.f32 %v186_v39, 0.0 }
  0xac   :  { %v173_v50 = vadd.f32 %v398_v18, %v172_v31 }
  0xae   :  { %v208_v53 = vmax.f32 %v173_v50, 0.0 }
  0xb0   :  { %v187_v19 = vpop.f32.mrf.mxu2  ;;  %v202_v20 = vpop.f32.mrf.mxu3 }
  0xb1   :  { %v203_v21 = vadd.f32 %v398_v18, %v202_v20  ;;  %v188_v36 = vadd.f32 %v398_v18, %v187_v19 }
  0xb3   :  { %v220_v23 = vmax.f32 %v203_v21, 0.0  ;;  %v175_v38 = vpop.f32.mrf.mxu0  ;;  %v214_v40 = vmax.f32 %v188_v36, 0.0 }
  0xb4   :  { %v176_v48 = vadd.f32 %v398_v18, %v175_v38 }
  0xb5   :  { %362 = vmatpush.xpose.msk.msra.mxu1 %vm131_vm0, %v220_v23 }
  0xb6   :  { %v209_v51 = vmax.f32 %v176_v48, 0.0 }
  0xb8   :  { %v190_v27 = vpop.f32.mrf.mxu2 }
  0xb9   :  { %363 = vmatpush.xpose.msk.msra.mxu1 %vm131_vm0, %v219_v26  ;;  %v191_v34 = vadd.f32 %v398_v18, %v190_v27 }
  0xbb   :  { %v215_v37 = vmax.f32 %v191_v34, 0.0  ;;  %v177_v45 = vpop.f32.mrf.mxu0 }
  0xbc   :  { %v178_v47 = vadd.f32 %v398_v18, %v177_v45 }
  0xbd   :  { %364 = vmatpush.xpose.msk.msra.mxu1 %vm131_vm0, %v218_v29 }
  0xbe   :  { %v210_v49 = vmax.f32 %v178_v47, 0.0 }
  0xc0   :  { %v192_v32 = vpop.f32.mrf.mxu2 }
  0xc1   :  { %v193_v33 = vadd.f32 %v398_v18, %v192_v32  ;;  %365 = vmatpush.xpose.msk.msra.mxu1 %vm131_vm0, %v217_v30 }
  0xc3   :  { %v216_v35 = vmax.f32 %v193_v33, 0.0 }
  0xc5   :  { %366 = vmatpush.xpose.msk.msra.mxu1 %vm131_vm0, %v216_v35 }
  0xc9   :  { %367 = vmatpush.xpose.msk.msra.mxu1 %vm131_vm0, %v215_v37 }
  0xcd   :  { %368 = vmatpush.xpose.msk.msra.mxu1 %vm131_vm0, %v214_v40 }
  0xd1   :  { %369 = vmatpush.xpose.msk.msra.mxu1 %vm131_vm0, %v213_v42 }
  0xd5   :  { %370 = vmatpush.xpose.msk.msra.mxu1 %vm131_vm0, %v212_v44 }
  0xd9   :  { %371 = vmatpush.xpose.msk.msra.mxu1 %vm131_vm0, %v211_v46 }
  0xdd   :  { %372 = vmatpush.xpose.msk.msra.mxu1 %vm131_vm0, %v210_v49 }
  0xe1   :  { %373 = vmatpush.xpose.msk.msra.mxu1 %vm131_vm0, %v209_v51 }
  0xe5   :  { %374 = vmatpush.xpose.msk.msra.mxu1 %vm131_vm0, %v208_v53 }
  0xe9   :  { %375 = vmatpush.xpose.msk.msra.mxu1 %vm131_vm0, %v207_v55 }
  0xed   :  { %376 = vmatpush.xpose.msk.msra.mxu1 %vm131_vm0, %v206_v57 }
  0xf1   :  { %377 = vmatpush.xpose.msk.msra.mxu1 %vm131_vm0, %v205_v58 }
  0xf4   :  { %378 = vmatmul.msk.f32.vlgmr.msra.gmra.mxu1 %vm131_vm0, %v221_v59 }
 0x171   :  { %v292_v61 = vpop.f32.mrf.mxu1 }
 0x172   :  { %v293_v62 = vadd.f32 %v292_v61, %v223_v60 }
 0x174   :  { %295 = vst [vmem:[#allocation8] sm:$0x1] %v293_v62 }
 0x175   :  { %306 = dma.vmem_to_hbm [thread:$0]  %s302_s9, 16, %s304_s12, [#allocation5]  }
 0x176   :  { %475 = dma.done.wait [#allocation5], 16  }
 0x177   :  { %476 = vsyncadd [#allocation5], 4294967280 }
 0x178   :  { %311 = vsyncpa [#allocation4], 1 }
 0x179   :  { %312 = vsyncpa [#allocation7], 1 }
 0x17a   :  { %313 = vsyncpa [#allocation5], 1 }

</bundles_post_ra>
